<compile_context>
chip_gen: v5e
topology: v5e:2x2
jax: 0.10.0
libtpu: 0.0.40
codegen_flags: <defaults>
</compile_context>

<pallas_src>
import jax
import jax.numpy as jnp
from jax.experimental import pallas as pl
from jax.experimental.pallas import tpu as pltpu

LANE = 128
_TARGET_TILE_BYTES = 4 << 20      # ~4 MiB per input tile
_VMEM_LIMIT_BYTES = 32 << 20      # raise v5e's 16 MiB scoped default; OK on v6e/v7x
_SPLIT_THRESHOLD_BYTES = 2 << 20  # tensors above this get >= 2 grid steps (v7x megacore)


def _abs_kernel(x_ref, o_ref):
    # Elementwise |x| on one lane-dense tile (VPU).
    o_ref[...] = jnp.abs(x_ref[...])


def _compiler_params():
    return pltpu.CompilerParams(
        dimension_semantics=("parallel",),
        vmem_limit_bytes=_VMEM_LIMIT_BYTES,
    )


def _round_down_mult(x, m):
    return max(m, (x // m) * m)


def abs_pallas(x):
    """Equivalent of torch.abs(x), computed with a Pallas TPU kernel."""
    orig_shape = x.shape
    n = x.size
    itemsize = jnp.dtype(x.dtype).itemsize

    if n == 0:
        return x

    # ---------- Fast path: flatten to a lane-dense (m, 128) slab -----------
    if n % LANE == 0:
        m = n // LANE
        x2 = x.reshape(m, LANE)
        row_bytes = LANE * itemsize
        total_bytes = n * itemsize

        # Largest block that keeps double-buffered in+out (4 tiles) well under
        # the 32 MiB scoped-VMEM budget.  Multiple of 32 rows keeps the
        # (sublane, 128) constraint satisfied for f32 / bf16 / int8.
        block_m = _round_down_mult(_TARGET_TILE_BYTES // row_bytes, 32)

        if m <= block_m:
            if total_bytes > _SPLIT_THRESHOLD_BYTES and m >= 64:
                # Medium tensor: at least two blocks so the parallel grid axis
                # can shard across both v7x TensorCores and the pipeliner can
                # overlap DMA with compute.
                block_m = min(_round_down_mult(pl.cdiv(m, 2), 32), m)
            else:
                block_m = m  # single full block (full dims exempt from (8,128))

        grid_m = pl.cdiv(m, block_m)

        out2 = pl.pallas_call(
            _abs_kernel,
            out_shape=jax.ShapeDtypeStruct((m, LANE), x.dtype),
            grid=(grid_m,),
            in_specs=[pl.BlockSpec((block_m, LANE), lambda i: (i, 0))],
            out_specs=pl.BlockSpec((block_m, LANE), lambda i: (i, 0)),
            compiler_params=_compiler_params(),
        )(x2)
        return out2.reshape(orig_shape)

    # ---------- Fallback: element count not divisible by 128 ----------------
    if x.ndim <= 1:
        # 0-D / 1-D: tile the flat vector with a 128-multiple block (or a
        # single full block when it is smaller than one lane row).
        x1 = x.reshape(-1)
        n1 = x1.shape[0]
        block = _round_down_mult(min(_TARGET_TILE_BYTES // itemsize, n1), LANE)
        if n1 <= block or n1 < LANE:
            block = n1
        out1 = pl.pallas_call(
            _abs_kernel,
            out_shape=jax.ShapeDtypeStruct((n1,), x.dtype),
            grid=(pl.cdiv(n1, block),),
            in_specs=[pl.BlockSpec((block,), lambda i: (i,))],
            out_specs=pl.BlockSpec((block,), lambda i: (i,)),
            compiler_params=_compiler_params(),
        )(x1)
        return out1.reshape(orig_shape)

    # ndim >= 2: tile the leading dim; trailing dims stay full (exempt from
    # the (8,128) rule), so VMEM stays bounded and pipelining is preserved.
    lead = orig_shape[0]
    trailing = orig_shape[1:]
    row_bytes = itemsize
    for d in trailing:
        row_bytes *= d
    block_rows = max(1, _TARGET_TILE_BYTES // row_bytes)
    if x.ndim == 2 and block_rows < lead:
        # For rank-2 the leading dim is the sublane dim of the block:
        # multiple of 8 unless it covers the full extent.
        block_rows = _round_down_mult(block_rows, 8)
    block_rows = min(block_rows, lead)

    nd = x.ndim
    block_shape = (block_rows,) + tuple(trailing)
    idx_map = lambda i: (i,) + (0,) * (nd - 1)

    return pl.pallas_call(
        _abs_kernel,
        out_shape=jax.ShapeDtypeStruct(orig_shape, x.dtype),
        grid=(pl.cdiv(lead, block_rows),),
        in_specs=[pl.BlockSpec(block_shape, idx_map)],
        out_specs=pl.BlockSpec(block_shape, idx_map),
        compiler_params=_compiler_params(),
    )(x)


if __name__ == "__main__":
    key = jax.random.PRNGKey(0)
    x = jax.random.normal(key, (2, 4, 16, 16), dtype=jnp.float32)

    out = abs_pallas(x)
    out = jax.block_until_ready(out)

    ref = jnp.abs(x)
    assert out.shape == ref.shape, (out.shape, ref.shape)
    assert out.dtype == ref.dtype
    assert bool(jnp.array_equal(out, ref))

    # Exercise the non-128-divisible fallback on a small odd shape too.
    y = jax.random.normal(jax.random.PRNGKey(1), (3, 5, 7), dtype=jnp.float32)
    out_y = jax.block_until_ready(abs_pallas(y))
    assert bool(jnp.array_equal(out_y, jnp.abs(y)))

    print("KERNEL_OK")
</pallas_src>

<mosaic_0001>
module attributes {stable_mosaic.version = 11 : i64} {
  func.func @_abs_kernel(%arg0: i32, %arg1: memref<16x128xf32, #tpu.memory_space<vmem>>, %arg2: memref<16x128xf32, #tpu.memory_space<vmem>>) attributes {dimension_semantics = [#tpu.dimension_semantics<parallel>], iteration_bounds = array<i64: 1>, scalar_prefetch = 0 : i64, scratch_operands = 0 : i64, tpu.core_type = #tpu.core_type<tc>, window_params = [{transform_indices = @transform_0, window_bounds = array<i64: 16, 128>}, {transform_indices = @transform_1, window_bounds = array<i64: 16, 128>}]} {
    %c0 = arith.constant 0 : index
    %c0_0 = arith.constant 0 : index
    %0 = vector.load %arg1[%c0, %c0_0] : memref<16x128xf32, #tpu.memory_space<vmem>>, vector<16x128xf32>
    %1 = math.absf %0 : vector<16x128xf32>
    %c0_1 = arith.constant 0 : index
    %c0_2 = arith.constant 0 : index
    %2 = vector.load %arg2[%c0_1, %c0_2] : memref<16x128xf32, #tpu.memory_space<vmem>>, vector<16x128xf32>
    tpu.vector_store %arg2[%c0_1, %c0_2], %1 {strides = array<i32>} : memref<16x128xf32, #tpu.memory_space<vmem>>, vector<16x128xf32>,
    return
  }
  func.func @transform_0(%arg0: i32) -> (i32, i32) {
    %c0_i32 = arith.constant 0 : i32
    %c0_i32_0 = arith.constant 0 : i32
    return %arg0, %c0_i32 : i32, i32
  }
  func.func @transform_1(%arg0: i32) -> (i32, i32) {
    %c0_i32 = arith.constant 0 : i32
    %c0_i32_0 = arith.constant 0 : i32
    return %arg0, %c0_i32 : i32, i32
  }
}

</mosaic_0001>

<bundles_post_ra>
// kernel: tpu_custom_call.1
= control target key start
LH: loop header
LB: loop body
LE: loop exit
PB: predicated region body
PF: predicated region fallthrough
CT: control target
= control target key end

     0   :  { %6 = vsyncpa [#allocation3], 0  ;;  %s126_s0 = inlined_call_operand.hbm [shape: f32[16,128], index: 0, kind: input, shape index: {}]   ;;  %s127_s1 = inlined_call_operand.hbm [shape: f32[16,128], index: 1, kind: output, shape index: {}]  }
   0x1   :  { %7 = vsyncpa [#allocation4], 0  ;;  %s12_s8 = sshll.u32 %s126_s0, 4  ;;  %s106_s9 = smov [#allocation2]   ;;  %s13_s8 = int_to_ptr.hbm [resolvable:$true] %s12_s8 }
   0x2   :  { %s14_s10 = sshll.u32 %s106_s9, 4  ;;  %s107_s11 = smov 128   ;;  %s15_s10 = int_to_ptr.vmem [resolvable:$true] %s14_s10 }
   0x3   :  { %s108_s12 = smov 8  }
   0x4   :  { %20 = dma.hbm_to_vmem [thread:$0]  %s13_s8, 256, %s15_s10, [#allocation3], %s107_s11, %s107_s11, %s108_s12  }
   0x5   :  { %102 = dma.done.wait [#allocation3], 256  }
   0x6   :  { %103 = vsyncadd [#allocation3], 4294967040  ;;  %s109_s13 = smov [#allocation5]   ;;  %s37_s17 = sshll.u32 %s127_s1, 4  ;;  %v25_v0 = vld [vmem:[#allocation2] sm:$0xff]  ;;  %v26_v1 = vld [vmem:[#allocation2 + $0x8] sm:$0xff]  ;;  %s38_s17 = int_to_ptr.hbm [resolvable:$true] %s37_s17 }
   0x7   :  { %s35_s14 = sshll.u32 %s109_s13, 4  ;;  %v27_v2 = vand.u32 2147483647, %v25_v0  ;;  %v28_v3 = vand.u32 2147483647, %v26_v1  ;;  %s36_s14 = int_to_ptr.vmem [resolvable:$true] %s35_s14 }
   0x9   :  { %29 = vst [vmem:[#allocation5] sm:$0xff] %v27_v2 }
   0xa   :  { %30 = vst [vmem:[#allocation5 + $0x8] sm:$0xff] %v28_v3 }
   0xb   :  { %43 = dma.vmem_to_hbm [thread:$0]  %s36_s14, 256, %s38_s17, [#allocation4], %s107_s11, %s107_s11, %s108_s12  }
   0xc   :  { %104 = dma.done.wait [#allocation4], 256  }
   0xd   :  { %105 = vsyncadd [#allocation4], 4294967040 }
   0xe   :  { %48 = vsyncpa [#allocation3], 1 }
   0xf   :  { %49 = vsyncpa [#allocation4], 1 }

</bundles_post_ra>
